<compile_context>
chip_gen: v5e
topology: v5e:2x2
jax: 0.10.0
libtpu: 0.0.40
codegen_flags: <defaults>
</compile_context>

<pallas_src>
import jax
import jax.numpy as jnp
from jax.experimental import pallas as pl
from jax.experimental.pallas import tpu as pltpu

# ---- hyperparameters (module-level globals in the original file) ----
VOCAB_SIZE = 32
MAX_LEN = 16
D_MODEL = 32
LANE = 128            # lane-dense padded feature width
LN_EPS = 1e-5         # torch.nn.LayerNorm default


def embedding_kernel(idx_ref, table_ref, gb_ref, out_ref):
    n = idx_ref.shape[0]          # N = B*S rows
    vps = table_ref.shape[0]      # VOCAB_SIZE + S rows (tok rows then pos rows)

    tok = idx_ref[:, 0:1]         # (N, 1) token id in [0, VOCAB_SIZE)
    posv = idx_ref[:, 1:2]        # (N, 1) VOCAB_SIZE + position (precomputed)

    # Fused one-hot with two ones per row -> a single MXU contraction gives
    # tok_table[id] + pos_table[pos], already lane-padded to 128.
    col = jax.lax.broadcasted_iota(jnp.int32, (n, vps), 1)
    onehot = jnp.logical_or(col == tok, col == posv).astype(jnp.float32)
    emb = jnp.dot(onehot, table_ref[...],
                  preferred_element_type=jnp.float32)      # (N, 128)

    # LayerNorm over the D_MODEL real lanes.  Padding lanes are zero, so they
    # contribute nothing to sum(x) / sum(x^2); divide by D_MODEL explicitly.
    s1 = jnp.sum(emb, axis=-1, keepdims=True)
    s2 = jnp.sum(emb * emb, axis=-1, keepdims=True)
    mean = s1 * (1.0 / D_MODEL)
    var = s2 * (1.0 / D_MODEL) - mean * mean
    inv = jax.lax.rsqrt(var + LN_EPS)                       # EUP slot

    gamma = gb_ref[0:1, :]        # (1, 128), zero on padding lanes
    beta = gb_ref[1:2, :]         # (1, 128), zero on padding lanes
    # Padding lanes: (0 - mean)*inv*0 + 0 = 0, so output padding stays zero.
    out_ref[...] = ((emb - mean) * inv * gamma + beta).astype(out_ref.dtype)


def prepare_embedding(tok_table, pos_table, gamma, beta, seq_len):
    """One-time preparation (hoisted out of the per-call forward path):
    fused, lane-padded lookup table, packed gamma/beta, position offsets."""
    V, D = tok_table.shape
    assert V == VOCAB_SIZE and D == D_MODEL and seq_len <= MAX_LEN
    table = jnp.concatenate([tok_table, pos_table[:seq_len]], axis=0)  # (V+S, D)
    table = jnp.pad(table, ((0, 0), (0, LANE - D)))                    # (V+S, 128)
    gb = jnp.stack([gamma, beta], axis=0)                              # (2, D)
    gb = jnp.pad(gb, ((0, 0), (0, LANE - D)))                          # (2, 128)
    pos_plus_v = jnp.arange(seq_len, dtype=jnp.int32) + V              # (S,)
    return table, gb, pos_plus_v


def embedding_forward(ids, table, gb, pos_plus_v):
    """ids: (B, S) int32 token indices (must be in [0, VOCAB_SIZE)).
    Returns (B, S, D_MODEL) float32."""
    B, S = ids.shape
    N = B * S

    # Single (N, 2) index array: [token_id, VOCAB_SIZE + position].
    idx = jnp.stack(
        [ids.reshape(N).astype(jnp.int32), jnp.tile(pos_plus_v, B)],
        axis=-1,
    )

    vmem = pl.BlockSpec(memory_space=pltpu.MemorySpace.VMEM)
    out = pl.pallas_call(
        embedding_kernel,
        out_shape=jax.ShapeDtypeStruct((N, LANE), jnp.float32),
        in_specs=[vmem, vmem, vmem],
        out_specs=vmem,
    )(idx, table, gb)

    return out[:, :D_MODEL].reshape(B, S, D_MODEL)


if __name__ == "__main__":
    B, S = 2, 8
    key = jax.random.PRNGKey(0)
    k_ids, k_tok, k_pos, k_g, k_b = jax.random.split(key, 5)

    ids = jax.random.randint(k_ids, (B, S), 0, VOCAB_SIZE, dtype=jnp.int32)
    tok_table = jax.random.normal(k_tok, (VOCAB_SIZE, D_MODEL), jnp.float32)
    pos_table = jax.random.normal(k_pos, (MAX_LEN, D_MODEL), jnp.float32)
    gamma = 1.0 + 0.1 * jax.random.normal(k_g, (D_MODEL,), jnp.float32)
    beta = 0.1 * jax.random.normal(k_b, (D_MODEL,), jnp.float32)

    table, gb, pos_plus_v = prepare_embedding(tok_table, pos_table, gamma, beta, S)
    out = embedding_forward(ids, table, gb, pos_plus_v)
    jax.block_until_ready(out)

    # pure-JAX reference (same math as the PyTorch module)
    emb = tok_table[ids] + pos_table[jnp.arange(S)][None, :, :]
    mean = jnp.mean(emb, axis=-1, keepdims=True)
    var = jnp.mean((emb - mean) ** 2, axis=-1, keepdims=True)
    ref = (emb - mean) * jax.lax.rsqrt(var + LN_EPS) * gamma + beta

    assert out.shape == (B, S, D_MODEL)
    assert bool(jnp.all(jnp.isfinite(out)))
    assert bool(jnp.allclose(out, ref, atol=2e-5, rtol=2e-5))
    print("KERNEL_OK")
</pallas_src>

<mosaic_0001>
module attributes {stable_mosaic.version = 11 : i64} {
  func.func @embedding_kernel(%arg0: memref<16x2xi32, #tpu.memory_space<vmem>>, %arg1: memref<40x128xf32, #tpu.memory_space<vmem>>, %arg2: memref<2x128xf32, #tpu.memory_space<vmem>>, %arg3: memref<16x128xf32, #tpu.memory_space<vmem>>) attributes {dimension_semantics = [], scalar_prefetch = 0 : i64, scratch_operands = 0 : i64, tpu.core_type = #tpu.core_type<tc>} {
    %c0 = arith.constant 0 : index
    %c0_0 = arith.constant 0 : index
    %0 = vector.load %arg0[%c0, %c0_0] : memref<16x2xi32, #tpu.memory_space<vmem>>, vector<16x1xi32>
    %c0_1 = arith.constant 0 : index
    %c1 = arith.constant 1 : index
    %1 = vector.load %arg0[%c0_1, %c1] : memref<16x2xi32, #tpu.memory_space<vmem>>, vector<16x1xi32>
    %2 = tpu.iota {dimensions = array<i32: 1>} : vector<16x40xi32>
    %3 = vector.broadcast %0 : vector<16x1xi32> to vector<16x40xi32>
    %4 = arith.cmpi eq, %2, %3 : vector<16x40xi32>
    %5 = vector.broadcast %1 : vector<16x1xi32> to vector<16x40xi32>
    %6 = arith.cmpi eq, %2, %5 : vector<16x40xi32>
    %7 = arith.ori %4, %6 : vector<16x40xi1>
    %8 = arith.extui %7 : vector<16x40xi1> to vector<16x40xi32>
    %9 = arith.sitofp %8 : vector<16x40xi32> to vector<16x40xf32>
    %c0_2 = arith.constant 0 : index
    %c0_3 = arith.constant 0 : index
    %10 = vector.load %arg1[%c0_2, %c0_3] : memref<40x128xf32, #tpu.memory_space<vmem>>, vector<40x128xf32>
    %cst = arith.constant dense<0.000000e+00> : vector<16x128xf32>
    %11 = tpu.matmul %9, %10, %cst {dimension_numbers = #tpu.dot_dimension_numbers<[1], [0], [0], [1], [0, 0, 1, 1], [], []>} : vector<16x40xf32>, vector<40x128xf32>, vector<16x128xf32> -> vector<16x128xf32>
    %cst_4 = arith.constant dense<0.000000e+00> : vector<16xf32>
    %12 = vector.multi_reduction <add>, %11, %cst_4 [1] : vector<16x128xf32> to vector<16xf32>
    %13 = vector.shape_cast %12 : vector<16xf32> to vector<16x1xf32>
    %14 = arith.mulf %11, %11 : vector<16x128xf32>
    %cst_5 = arith.constant dense<0.000000e+00> : vector<16xf32>
    %15 = vector.multi_reduction <add>, %14, %cst_5 [1] : vector<16x128xf32> to vector<16xf32>
    %16 = vector.shape_cast %15 : vector<16xf32> to vector<16x1xf32>
    %cst_6 = arith.constant 3.125000e-02 : f32
    %17 = vector.broadcast %cst_6 : f32 to vector<16x1xf32>
    %18 = arith.mulf %13, %17 : vector<16x1xf32>
    %cst_7 = arith.constant 3.125000e-02 : f32
    %19 = vector.broadcast %cst_7 : f32 to vector<16x1xf32>
    %20 = arith.mulf %16, %19 : vector<16x1xf32>
    %21 = arith.mulf %18, %18 : vector<16x1xf32>
    %22 = arith.subf %20, %21 : vector<16x1xf32>
    %cst_8 = arith.constant 9.99999974E-6 : f32
    %23 = vector.broadcast %cst_8 : f32 to vector<16x1xf32>
    %24 = arith.addf %22, %23 : vector<16x1xf32>
    %25 = math.rsqrt %24 : vector<16x1xf32>
    %c0_9 = arith.constant 0 : index
    %c0_10 = arith.constant 0 : index
    %26 = vector.load %arg2[%c0_9, %c0_10] : memref<2x128xf32, #tpu.memory_space<vmem>>, vector<1x128xf32>
    %c1_11 = arith.constant 1 : index
    %c0_12 = arith.constant 0 : index
    %27 = vector.load %arg2[%c1_11, %c0_12] : memref<2x128xf32, #tpu.memory_space<vmem>>, vector<1x128xf32>
    %28 = vector.broadcast %18 : vector<16x1xf32> to vector<16x128xf32>
    %29 = arith.subf %11, %28 : vector<16x128xf32>
    %30 = vector.broadcast %25 : vector<16x1xf32> to vector<16x128xf32>
    %31 = arith.mulf %29, %30 : vector<16x128xf32>
    %32 = vector.broadcast %26 : vector<1x128xf32> to vector<16x128xf32>
    %33 = arith.mulf %31, %32 : vector<16x128xf32>
    %34 = vector.broadcast %27 : vector<1x128xf32> to vector<16x128xf32>
    %35 = arith.addf %33, %34 : vector<16x128xf32>
    %c0_13 = arith.constant 0 : index
    %c0_14 = arith.constant 0 : index
    %36 = vector.load %arg3[%c0_13, %c0_14] : memref<16x128xf32, #tpu.memory_space<vmem>>, vector<16x128xf32>
    tpu.vector_store %arg3[%c0_13, %c0_14], %35 {strides = array<i32>} : memref<16x128xf32, #tpu.memory_space<vmem>>, vector<16x128xf32>,
    return
  }
}

</mosaic_0001>

<bundles_post_ra>
// kernel: tpu_custom_call.1
= control target key start
LH: loop header
LB: loop body
LE: loop exit
PB: predicated region body
PF: predicated region fallthrough
CT: control target
= control target key end

     0   :  { %8 = vsyncpa [#allocation3], 0  ;;  %s293_s0 = inlined_call_operand.vmem [shape: s32[16,2], index: 0, kind: input, shape index: {}]   ;;  %s294_s1 = inlined_call_operand.hbm [shape: f32[40,128], index: 1, kind: input, shape index: {}]   ;;  %s295_s2 = inlined_call_operand.vmem [shape: f32[2,128], index: 2, kind: input, shape index: {}]   ;;  %s296_s3 = inlined_call_operand.hbm [shape: f32[16,128], index: 3, kind: output, shape index: {}]  }
   0x1   :  { %9 = vsyncpa [#allocation4], 0  ;;  %s16_s14 = sshll.u32 %s294_s1, 4  ;;  %s242_s15 = smov [#allocation2]   ;;  %s17_s14 = int_to_ptr.hbm [resolvable:$true] %s16_s14 }
   0x2   :  { %s18_s16 = sshll.u32 %s242_s15, 4  ;;  %s243_s17 = smov 128   ;;  %s19_s16 = int_to_ptr.vmem [resolvable:$true] %s18_s16 }
   0x3   :  { %s244_s18 = smov 8  }
   0x4   :  { %24 = dma.hbm_to_vmem [thread:$0]  %s17_s14, 640, %s19_s16, [#allocation3], %s243_s17, %s243_s17, %s244_s18  }
   0x5   :  { %238 = dma.done.wait [#allocation3], 640  }
   0x6   :  { %239 = vsyncadd [#allocation3], 4294966656  ;;  %v245_v0 = vmov 1   ;;  %v246_v1 = vmov 0   ;;  %v31_v2 = vld [vmem:[%s293_s0] sm:$0xff]  ;;  %v60_v4 = vld [vmem:[#allocation2 + $0x18] sm:$0xff]  ;;  %v33_v9 = vlaneseq }
   0x7   :  { %182 = vset.pattern.permute.xlu1 %v245_v0  ;;  %181 = vset.pattern.permute.xlu0 %v246_v1  ;;  %v61_v3 = vld [vmem:[#allocation2 + $0x20] sm:$0xff]  ;;  %v59_v5 = vld [vmem:[#allocation2 + $0x10] sm:$0xff]  ;;  %v32_v6 = vld [vmem:[%s293_s0 + $0x8] sm:$0xff]  ;;  %vm62_vm2 = vcmask 326656   ;;  %v247_v13 = vmov 0.0   ;;  %s248_s25 = smov [#allocation5]  }
   0x8   :  { %44 = vperm.xlu1 %182, %v31_v2   ;;  %36 = vperm.xlu0 %181, %v31_v2   ;;  %v58_v7 = vld [vmem:[#allocation2 + $0x8] sm:$0xff]  ;;  %v57_v8 = vld [vmem:[#allocation2] sm:$0xff]  ;;  %v34_v10 = vand.u32 127, %v33_v9  ;;  %s150_s26 = sshll.u32 %s248_s25, 4  ;;  %s152_s29 = sshll.u32 %s296_s3, 4  ;;  %s151_s26 = int_to_ptr.vmem [resolvable:$true] %s150_s26  ;;  %s153_s29 = int_to_ptr.hbm [resolvable:$true] %s152_s29 }
   0x9   :  { %80 = vmatpush.msra.mxu0 %v61_v3  ;;  %169 = vmatpush.msra.mxu1 %v61_v3  ;;  %v184_v45 = vld [vmem:[%s295_s2] ss:$0 sm:$0xff]  ;;  %v185_v49 = vld [vmem:[%s295_s2 + $0x1] ss:$0 sm:$0xff] }
   0xb   :  { %81 = vmatpush.msra.mxu0 %v60_v4  ;;  %170 = vmatpush.msra.mxu1 %v60_v4 }
   0xd   :  { %82 = vmatpush.msra.mxu0 %v59_v5  ;;  %171 = vmatpush.msra.mxu1 %v59_v5 }
   0xf   :  { %83 = vmatpush.msra.mxu0 %v58_v7  ;;  %172 = vmatpush.msra.mxu1 %v58_v7 }
  0x10   :  { %47 = vperm.xlu1 %182, %v32_v6   ;;  %39 = vperm.xlu0 %181, %v32_v6  }
  0x11   :  { %84 = vmatpush.msra.mxu0 %v57_v8  ;;  %173 = vmatpush.msra.mxu1 %v57_v8 }
  0x18   :  { %183 = vset.pattern.permute.xlu0 %v245_v0 }
  0x7a   :  { %v45_v11 = vpop.permute.xlu1 %44  ;;  %v37_v12 = vpop.permute.xlu0 %36 }
  0x7b   :  { %vm49_vm0 = vcmp.eq.s32.totalorder %v34_v10, %v45_v11  ;;  %vm41_vm1 = vcmp.eq.s32.totalorder %v34_v10, %v37_v12 }
  0x7c   :  { %vm51_vm3 = vmor %vm41_vm1, %vm49_vm0 }
  0x7d   :  { %v165_v14 = vsel %vm51_vm3, 1.0, %v247_v13 }
  0x7e   :  { %167 = vmatmul.msk.f32.vlgmr.msra.gmra.mxu0 %vm62_vm2, %v165_v14 }
  0x82   :  { %v48_v15 = vpop.permute.xlu1 %47  ;;  %v40_v16 = vpop.permute.xlu0 %39 }
  0x83   :  { %vm50_vm4 = vcmp.eq.s32.totalorder %v34_v10, %v48_v15  ;;  %vm42_vm5 = vcmp.eq.s32.totalorder %v34_v10, %v40_v16 }
  0x84   :  { %vm52_vm6 = vmor %vm42_vm5, %vm50_vm4 }
  0x85   :  { %v166_v17 = vsel %vm52_vm6, 1.0, %v247_v13 }
  0x86   :  { %168 = vmatmul.msk.f32.vlgmr.msra.gmra.mxu1 %vm62_vm2, %v166_v17 }
  0xfb   :  { %v86_v18 = vpop.f32.mrf.mxu0 }
  0xfc   :  { %92 = vadd.xlane.f32.xlu2 %v86_v18  ;;  %v96_v19 = vmul.f32 %v86_v18, %v86_v18 }
  0xfe   :  { %98 = vadd.xlane.f32.xlu0 %v96_v19 }
 0x103   :  { %v89_v20 = vpop.f32.mrf.mxu1 }
 0x104   :  { %94 = vadd.xlane.f32.xlu2 %v89_v20  ;;  %v97_v21 = vmul.f32 %v89_v20, %v89_v20 }
 0x106   :  { %100 = vadd.xlane.f32.xlu1 %v97_v21 }
 0x16f   :  { %v93_v22 = vpop.xlane.xlu2 %92 }
 0x170   :  { %v102_v23 = vmul.f32 0.03125, %v93_v22 }
 0x171   :  { %v99_v24 = vpop.xlane.xlu0 %98 }
 0x172   :  { %v106_v25 = vmul.f32 %v102_v23, %v102_v23  ;;  %v104_v26 = vmul.f32 0.03125, %v99_v24  ;;  %v134_v44 = vsub.f32 %v86_v18, %v102_v23 }
 0x174   :  { %v108_v27 = vsub.f32 %v104_v26, %v106_v25 }
 0x176   :  { %v110_v28 = vadd.f32 1e-05, %v108_v27 }
 0x177   :  { %v95_v29 = vpop.xlane.xlu2 %94 }
 0x178   :  { %186 = vrsqrt.f32 %v110_v28  ;;  %v103_v30 = vmul.f32 0.03125, %v95_v29  ;;  %vm118_vm8 = vweird.f32 %v110_v28 }
 0x179   :  { %v101_v31 = vpop.xlane.xlu1 %100 }
 0x17a   :  { %v107_v32 = vmul.f32 %v103_v30, %v103_v30  ;;  %v105_v33 = vmul.f32 0.03125, %v101_v31  ;;  %v135_v55 = vsub.f32 %v89_v20, %v103_v30 }
 0x17c   :  { %v109_v34 = vsub.f32 %v105_v33, %v107_v32 }
 0x17e   :  { %v187_v35 = vpop.eup %186  ;;  %v111_v36 = vadd.f32 1e-05, %v109_v34 }
 0x17f   :  { %v113_v37 = vmul.f32 %v187_v35, %v110_v28  ;;  %vm119_vm7 = vweird.f32 %v187_v35 }
 0x180   :  { %188 = vrsqrt.f32 %v111_v36  ;;  %vm120_vm9 = vmor %vm118_vm8, %vm119_vm7  ;;  %vm128_vm11 = vweird.f32 %v111_v36 }
 0x181   :  { %v114_v38 = vmul.f32 %v187_v35, %v113_v37 }
 0x183   :  { %v115_v39 = vmul.f32 0.5, %v114_v38 }
 0x185   :  { %v116_v40 = vsub.f32 1.5, %v115_v39 }
 0x186   :  { %v189_v41 = vpop.eup %188 }
 0x187   :  { %v117_v42 = vmul.f32 %v187_v35, %v116_v40  ;;  %v123_v43 = vmul.f32 %v189_v41, %v111_v36  ;;  %vm129_vm10 = vweird.f32 %v189_v41 }
 0x188   :  { %vm130_vm12 = vmor %vm128_vm11, %vm129_vm10 }
 0x189   :  { %v121_v46 = vsel %vm120_vm9, %v187_v35, %v117_v42  ;;  %v124_v47 = vmul.f32 %v189_v41, %v123_v43 }
 0x18a   :  { %v136_v48 = vmul.f32 %v134_v44, %v121_v46 }
 0x18b   :  { %v125_v50 = vmul.f32 0.5, %v124_v47 }
 0x18c   :  { %v139_v51 = vmul.f32 %v184_v45, %v136_v48 }
 0x18d   :  { %v126_v52 = vsub.f32 1.5, %v125_v50 }
 0x18e   :  { %v142_v53 = vadd.f32 %v185_v49, %v139_v51 }
 0x18f   :  { %v127_v54 = vmul.f32 %v189_v41, %v126_v52 }
 0x190   :  { %144 = vst [vmem:[#allocation5] sm:$0xff] %v142_v53 }
 0x191   :  { %v131_v56 = vsel %vm130_vm12, %v189_v41, %v127_v54 }
 0x192   :  { %v137_v57 = vmul.f32 %v135_v55, %v131_v56 }
 0x194   :  { %v140_v58 = vmul.f32 %v184_v45, %v137_v57 }
 0x196   :  { %v143_v59 = vadd.f32 %v185_v49, %v140_v58 }
 0x198   :  { %145 = vst [vmem:[#allocation5 + $0x8] sm:$0xff] %v143_v59 }
 0x199   :  { %158 = dma.vmem_to_hbm [thread:$0]  %s151_s26, 256, %s153_s29, [#allocation4], %s243_s17, %s243_s17, %s244_s18  }
 0x19a   :  { %240 = dma.done.wait [#allocation4], 256  }
 0x19b   :  { %241 = vsyncadd [#allocation4], 4294967040 }
 0x19c   :  { %163 = vsyncpa [#allocation3], 1 }
 0x19d   :  { %164 = vsyncpa [#allocation4], 1 }

</bundles_post_ra>
